<compile_context>
chip_gen: v5e
topology: v5e:2x2
jax: 0.10.0
libtpu: 0.0.40
codegen_flags: <defaults>
</compile_context>

<pallas_src>
import functools

import numpy as np
import jax
import jax.numpy as jnp
from jax.experimental import pallas as pl
from jax.experimental.pallas import tpu as pltpu


def mlp_kernel(xT_ref, w1_ref, b1_ref, w2_ref, b2_ref, w3_ref, b3_ref, oT_ref,
               *, act_dtype):
    """One batch tile; activations are (features, batch_tile) -> batch on lanes."""
    # Layer 1: (h1, in) @ (in, TM) -> (h1, TM); f32 MXU accumulation + f32 bias.
    z1 = (jnp.dot(w1_ref[...], xT_ref[...], preferred_element_type=jnp.float32)
          + b1_ref[...])
    h1 = jnp.tanh(z1.astype(act_dtype)).astype(w2_ref.dtype)

    # Layer 2: (h2, h1) @ (h1, TM) -> (h2, TM)
    z2 = (jnp.dot(w2_ref[...], h1, preferred_element_type=jnp.float32)
          + b2_ref[...])
    h2 = jnp.tanh(z2.astype(act_dtype)).astype(w3_ref.dtype)

    # Output layer: (out, h2) @ (h2, TM) -> (out, TM), no activation.
    # Cast right at the dot output; store is fully lane-dense (TM % 128 == 0).
    out = (jnp.dot(w3_ref[...], h2, preferred_element_type=jnp.float32)
           + b3_ref[...])
    oT_ref[...] = out.astype(oT_ref.dtype)


def _round_up(a, m):
    return (a + m - 1) // m * m


def _act_dtype_for_device():
    """bf16 tanh only where the VPU/EUP support bf16 (v6e / v7x)."""
    try:
        kind = jax.devices()[0].device_kind.lower()
    except Exception:
        return jnp.float32
    return jnp.bfloat16 if ("v6" in kind or "v7" in kind) else jnp.float32


def mlp_forward(x, w1, b1, w2, b2, w3, b3, *, tm_max=1024,
                compute_dtype=jnp.bfloat16, out_dtype=jnp.float32):
    """Fused forward: y = tanh(tanh(x @ W1^T + b1) @ W2^T + b2) @ W3^T + b3.

    x:  (B, input_size) f32
    wi: (out_i, in_i)   f32  -- PyTorch nn.Linear layout, used directly
    bi: (out_i,)        f32
    """
    B, in_size = x.shape
    h1_size = w1.shape[0]
    h2_size = w2.shape[0]
    out_size = w3.shape[0]

    # ---- batch tiling: batch lives on the lane axis -> multiples of 128 ----
    b_128 = _round_up(B, 128)
    # Aim for >= ~4 grid steps when the batch allows it (v7x megacore + DMA
    # overlap), never exceed tm_max or the (padded) batch itself.
    tm_eff = min(max(tm_max, 128), b_128,
                 max(256, _round_up(pl.cdiv(b_128, 4), 128)))
    tm_eff = max(tm_eff, 128)
    b_pad = _round_up(B, tm_eff)
    grid = (b_pad // tm_eff,)

    # ---- host-side layout: x^T (features, batch_pad), bf16 MXU operands ----
    xT = jnp.pad(x, ((0, b_pad - B), (0, 0))).T.astype(compute_dtype)
    w1_c = w1.astype(compute_dtype)
    w2_c = w2.astype(compute_dtype)
    w3_c = w3.astype(compute_dtype)
    b1_c = b1.reshape(h1_size, 1).astype(jnp.float32)
    b2_c = b2.reshape(h2_size, 1).astype(jnp.float32)
    b3_c = b3.reshape(out_size, 1).astype(jnp.float32)

    def resident(arr):
        # Full-array block, same block index every grid step -> VMEM-resident.
        return pl.BlockSpec(arr.shape, lambda i: (0, 0))

    # ---- VMEM budget: 2x (double-buffered) tiles + 2x resident weights ----
    cde = np.dtype(compute_dtype).itemsize
    ode = np.dtype(out_dtype).itemsize
    resident_bytes = 2 * sum(int(a.size) * a.dtype.itemsize
                             for a in (w1_c, b1_c, w2_c, b2_c, w3_c, b3_c))
    tile_bytes = 2 * (in_size * tm_eff * cde) + 2 * (out_size * tm_eff * ode)
    live_bytes = 3 * max(h1_size, h2_size, out_size) * tm_eff * 4  # f32 intermediates
    vmem_limit = int(min(max(4 * (resident_bytes + tile_bytes + live_bytes),
                             8 * 1024 * 1024),
                         48 * 1024 * 1024))

    flops = 2 * b_pad * (in_size * h1_size + h1_size * h2_size
                         + h2_size * out_size)
    transcendentals = b_pad * (h1_size + h2_size)
    bytes_accessed = (int(xT.size) * xT.dtype.itemsize
                      + b_pad * out_size * ode
                      + sum(int(a.size) * a.dtype.itemsize
                            for a in (w1_c, b1_c, w2_c, b2_c, w3_c, b3_c)))

    act_dtype = (_act_dtype_for_device()
                 if np.dtype(compute_dtype) == np.dtype(jnp.bfloat16)
                 else jnp.float32)

    outT = pl.pallas_call(
        functools.partial(mlp_kernel, act_dtype=act_dtype),
        out_shape=jax.ShapeDtypeStruct((out_size, b_pad), out_dtype),
        grid_spec=pltpu.PrefetchScalarGridSpec(
            num_scalar_prefetch=0,
            grid=grid,
            in_specs=[
                pl.BlockSpec((in_size, tm_eff), lambda i: (0, i)),  # x^T tile
                resident(w1_c), resident(b1_c),
                resident(w2_c), resident(b2_c),
                resident(w3_c), resident(b3_c),
            ],
            out_specs=pl.BlockSpec((out_size, tm_eff), lambda i: (0, i)),
        ),
        compiler_params=pltpu.CompilerParams(
            dimension_semantics=("parallel",),
            vmem_limit_bytes=vmem_limit,
        ),
        cost_estimate=pl.CostEstimate(
            flops=flops,
            transcendentals=transcendentals,
            bytes_accessed=bytes_accessed,
        ),
    )(xT, w1_c, b1_c, w2_c, b2_c, w3_c, b3_c)

    # Back to PyTorch's (B, out_size) layout; drop the batch pad.
    return outT.T[:B, :]


def init_linear_params(key, in_features, out_features):
    """Deterministic init mimicking nn.Linear's uniform(-1/sqrt(in), 1/sqrt(in)).

    Weights are kept in PyTorch's native (out_features, in_features) layout.
    """
    kw, kb = jax.random.split(key)
    bound = 1.0 / jnp.sqrt(jnp.float32(in_features))
    w = jax.random.uniform(kw, (out_features, in_features), jnp.float32,
                           -bound, bound)
    b = jax.random.uniform(kb, (out_features,), jnp.float32, -bound, bound)
    return w, b


if __name__ == "__main__":
    # Small shapes consistent with the module's forward.
    batch = 8
    input_size = 16
    hidden_size1 = 32
    hidden_size2 = 32
    output_size = 8

    key = jax.random.PRNGKey(0)
    kx, k1, k2, k3 = jax.random.split(key, 4)

    x = jax.random.normal(kx, (batch, input_size), jnp.float32)
    w1, b1 = init_linear_params(k1, input_size, hidden_size1)
    w2, b2 = init_linear_params(k2, hidden_size1, hidden_size2)
    w3, b3 = init_linear_params(k3, hidden_size2, output_size)

    out = mlp_forward(x, w1, b1, w2, b2, w3, b3)
    out = jax.block_until_ready(out)

    # Pure-JAX f32 reference (same math as the torch forward).  Tolerance is
    # loose because the kernel feeds the MXU bf16 inputs (and may use bf16 tanh).
    ref = jnp.tanh(x @ w1.T + b1)
    ref = jnp.tanh(ref @ w2.T + b2)
    ref = ref @ w3.T + b3

    assert out.shape == (batch, output_size)
    assert jnp.allclose(out, ref, atol=3e-2, rtol=3e-2), (
        f"max abs err {float(jnp.max(jnp.abs(out - ref)))}")

    print("KERNEL_OK")
</pallas_src>

<mosaic_0001>
module attributes {stable_mosaic.version = 11 : i64} {
  func.func @mlp_kernel(%arg0: i32, %arg1: memref<16x128xbf16, #tpu.memory_space<vmem>>, %arg2: memref<32x16xbf16, #tpu.memory_space<vmem>>, %arg3: memref<32x1xf32, #tpu.memory_space<vmem>>, %arg4: memref<32x32xbf16, #tpu.memory_space<vmem>>, %arg5: memref<32x1xf32, #tpu.memory_space<vmem>>, %arg6: memref<8x32xbf16, #tpu.memory_space<vmem>>, %arg7: memref<8x1xf32, #tpu.memory_space<vmem>>, %arg8: memref<8x128xf32, #tpu.memory_space<vmem>>) attributes {dimension_semantics = [#tpu.dimension_semantics<parallel>], iteration_bounds = array<i64: 1>, scalar_prefetch = 0 : i64, scratch_operands = 0 : i64, tpu.core_type = #tpu.core_type<tc>, window_params = [{transform_indices = @transform_0, window_bounds = array<i64: 16, 128>}, {pipeline_mode = #tpu.pipeline_mode<synchronous>, transform_indices = @transform_1, window_bounds = array<i64: 32, 16>}, {pipeline_mode = #tpu.pipeline_mode<synchronous>, transform_indices = @transform_2, window_bounds = array<i64: 32, 1>}, {pipeline_mode = #tpu.pipeline_mode<synchronous>, transform_indices = @transform_3, window_bounds = array<i64: 32, 32>}, {pipeline_mode = #tpu.pipeline_mode<synchronous>, transform_indices = @transform_4, window_bounds = array<i64: 32, 1>}, {pipeline_mode = #tpu.pipeline_mode<synchronous>, transform_indices = @transform_5, window_bounds = array<i64: 8, 32>}, {pipeline_mode = #tpu.pipeline_mode<synchronous>, transform_indices = @transform_6, window_bounds = array<i64: 8, 1>}, {transform_indices = @transform_7, window_bounds = array<i64: 8, 128>}]} {
    %c0 = arith.constant 0 : index
    %c0_0 = arith.constant 0 : index
    %0 = vector.load %arg2[%c0, %c0_0] : memref<32x16xbf16, #tpu.memory_space<vmem>>, vector<32x16xbf16>
    %c0_1 = arith.constant 0 : index
    %c0_2 = arith.constant 0 : index
    %1 = vector.load %arg1[%c0_1, %c0_2] : memref<16x128xbf16, #tpu.memory_space<vmem>>, vector<16x128xbf16>
    %cst = arith.constant dense<0.000000e+00> : vector<32x128xf32>
    %2 = tpu.matmul %0, %1, %cst {dimension_numbers = #tpu.dot_dimension_numbers<[1], [0], [0], [1], [0, 0, 1, 1], [], []>} : vector<32x16xbf16>, vector<16x128xbf16>, vector<32x128xf32> -> vector<32x128xf32>
    %c0_3 = arith.constant 0 : index
    %c0_4 = arith.constant 0 : index
    %3 = vector.load %arg3[%c0_3, %c0_4] : memref<32x1xf32, #tpu.memory_space<vmem>>, vector<32x1xf32>
    %4 = vector.broadcast %3 : vector<32x1xf32> to vector<32x128xf32>
    %5 = arith.addf %2, %4 : vector<32x128xf32>
    %6 = math.tanh %5 : vector<32x128xf32>
    %7 = arith.truncf %6 : vector<32x128xf32> to vector<32x128xbf16>
    %c0_5 = arith.constant 0 : index
    %c0_6 = arith.constant 0 : index
    %8 = vector.load %arg4[%c0_5, %c0_6] : memref<32x32xbf16, #tpu.memory_space<vmem>>, vector<32x32xbf16>
    %cst_7 = arith.constant dense<0.000000e+00> : vector<32x128xf32>
    %9 = tpu.matmul %8, %7, %cst_7 {dimension_numbers = #tpu.dot_dimension_numbers<[1], [0], [0], [1], [0, 0, 1, 1], [], []>} : vector<32x32xbf16>, vector<32x128xbf16>, vector<32x128xf32> -> vector<32x128xf32>
    %c0_8 = arith.constant 0 : index
    %c0_9 = arith.constant 0 : index
    %10 = vector.load %arg5[%c0_8, %c0_9] : memref<32x1xf32, #tpu.memory_space<vmem>>, vector<32x1xf32>
    %11 = vector.broadcast %10 : vector<32x1xf32> to vector<32x128xf32>
    %12 = arith.addf %9, %11 : vector<32x128xf32>
    %13 = math.tanh %12 : vector<32x128xf32>
    %14 = arith.truncf %13 : vector<32x128xf32> to vector<32x128xbf16>
    %c0_10 = arith.constant 0 : index
    %c0_11 = arith.constant 0 : index
    %15 = vector.load %arg6[%c0_10, %c0_11] : memref<8x32xbf16, #tpu.memory_space<vmem>>, vector<8x32xbf16>
    %cst_12 = arith.constant dense<0.000000e+00> : vector<8x128xf32>
    %16 = tpu.matmul %15, %14, %cst_12 {dimension_numbers = #tpu.dot_dimension_numbers<[1], [0], [0], [1], [0, 0, 1, 1], [], []>} : vector<8x32xbf16>, vector<32x128xbf16>, vector<8x128xf32> -> vector<8x128xf32>
    %c0_13 = arith.constant 0 : index
    %c0_14 = arith.constant 0 : index
    %17 = vector.load %arg7[%c0_13, %c0_14] : memref<8x1xf32, #tpu.memory_space<vmem>>, vector<8x1xf32>
    %18 = vector.broadcast %17 : vector<8x1xf32> to vector<8x128xf32>
    %19 = arith.addf %16, %18 : vector<8x128xf32>
    %c0_15 = arith.constant 0 : index
    %c0_16 = arith.constant 0 : index
    %20 = vector.load %arg8[%c0_15, %c0_16] : memref<8x128xf32, #tpu.memory_space<vmem>>, vector<8x128xf32>
    tpu.vector_store %arg8[%c0_15, %c0_16], %19 {strides = array<i32>} : memref<8x128xf32, #tpu.memory_space<vmem>>, vector<8x128xf32>,
    return
  }
  func.func @transform_0(%arg0: i32) -> (i32, i32) {
    %c0_i32 = arith.constant 0 : i32
    %c0_i32_0 = arith.constant 0 : i32
    return %c0_i32, %arg0 : i32, i32
  }
  func.func @transform_1(%arg0: i32) -> (i32, i32) {
    %c0_i32 = arith.constant 0 : i32
    %c0_i32_0 = arith.constant 0 : i32
    %c0_i32_1 = arith.constant 0 : i32
    return %c0_i32, %c0_i32_0 : i32, i32
  }
  func.func @transform_2(%arg0: i32) -> (i32, i32) {
    %c0_i32 = arith.constant 0 : i32
    %c0_i32_0 = arith.constant 0 : i32
    %c0_i32_1 = arith.constant 0 : i32
    return %c0_i32, %c0_i32_0 : i32, i32
  }
  func.func @transform_3(%arg0: i32) -> (i32, i32) {
    %c0_i32 = arith.constant 0 : i32
    %c0_i32_0 = arith.constant 0 : i32
    %c0_i32_1 = arith.constant 0 : i32
    return %c0_i32, %c0_i32_0 : i32, i32
  }
  func.func @transform_4(%arg0: i32) -> (i32, i32) {
    %c0_i32 = arith.constant 0 : i32
    %c0_i32_0 = arith.constant 0 : i32
    %c0_i32_1 = arith.constant 0 : i32
    return %c0_i32, %c0_i32_0 : i32, i32
  }
  func.func @transform_5(%arg0: i32) -> (i32, i32) {
    %c0_i32 = arith.constant 0 : i32
    %c0_i32_0 = arith.constant 0 : i32
    %c0_i32_1 = arith.constant 0 : i32
    return %c0_i32, %c0_i32_0 : i32, i32
  }
  func.func @transform_6(%arg0: i32) -> (i32, i32) {
    %c0_i32 = arith.constant 0 : i32
    %c0_i32_0 = arith.constant 0 : i32
    %c0_i32_1 = arith.constant 0 : i32
    return %c0_i32, %c0_i32_0 : i32, i32
  }
  func.func @transform_7(%arg0: i32) -> (i32, i32) {
    %c0_i32 = arith.constant 0 : i32
    %c0_i32_0 = arith.constant 0 : i32
    return %c0_i32, %arg0 : i32, i32
  }
}

</mosaic_0001>

<bundles_post_ra>
// kernel: tpu_custom_call.1
= control target key start
LH: loop header
LB: loop body
LE: loop exit
PB: predicated region body
PF: predicated region fallthrough
CT: control target
= control target key end

     0   :  { %v295_v3 = vmov 0   ;;  %vm74_vm0 = vcmask 130048   ;;  %s388_s0 = inlined_call_operand.vmem [shape: bf16[16,128], index: 0, kind: input, shape index: {}]   ;;  %s389_s1 = inlined_call_operand.vmem [shape: bf16[32,16], index: 1, kind: input, shape index: {}]   ;;  %s390_s2 = inlined_call_operand.vmem [shape: f32[32,1], index: 2, kind: input, shape index: {}]   ;;  %s391_s3 = inlined_call_operand.vmem [shape: bf16[32,32], index: 3, kind: input, shape index: {}]   ;;  %s392_s4 = inlined_call_operand.vmem [shape: f32[32,1], index: 4, kind: input, shape index: {}]   ;;  %s393_s5 = inlined_call_operand.vmem [shape: bf16[8,32], index: 5, kind: input, shape index: {}]   ;;  %s394_s6 = inlined_call_operand.vmem [shape: f32[8,1], index: 6, kind: input, shape index: {}]   ;;  %s395_s7 = inlined_call_operand.hbm [shape: f32[8,128], index: 7, kind: output, shape index: {}]  }
   0x1   :  { %v243_v0 = vld [vmem:[%s388_s0] sm:$0xff]  ;;  %v36_v1 = vld [vmem:[%s390_s2 + $0x10] sm:$0xff]  ;;  %251 = vset.pattern.permute.xlu1 %v295_v3  ;;  %250 = vset.pattern.permute.xlu0 %v295_v3 }
   0x2   :  { %v241_v2 = vld [vmem:[%s389_s1] sm:$0xff]  ;;  %88 = vmatpush.bf16.msra.mxu0 %v243_v0  ;;  %50 = vperm.xlu0 %250, %v36_v1  }
   0x3   :  { %v34_v4 = vld [vmem:[%s390_s2] sm:$0xff]  ;;  %252 = vset.pattern.permute.xlu2 %v295_v3 }
   0x4   :  { %40 = vperm.xlu1 %251, %v34_v4  }
   0x5   :  { %12 = vsyncpa [#allocation3], 0  ;;  %228 = vmatmul.msk.bf16.vlgmr.msra.gmra.mxu0 %vm74_vm0, %v241_v2  ;;  %v37_v5 = vld [vmem:[%s390_s2 + $0x18] sm:$0xff]  ;;  %v35_v6 = vld [vmem:[%s390_s2 + $0x8] sm:$0xff]  ;;  %vm144_vm1 = vcmask 261120   ;;  %s296_s25 = smov [#allocation2]  }
   0x6   :  { %v110_v7 = vld [vmem:[%s392_s4] sm:$0xff]  ;;  %v111_v8 = vld [vmem:[%s392_s4 + $0x8] sm:$0xff]  ;;  %v112_v12 = vld [vmem:[%s392_s4 + $0x10] sm:$0xff]  ;;  %s205_s26 = sshll.u32 %s296_s25, 4  ;;  %s207_s29 = sshll.u32 %s395_s7, 4  ;;  %s206_s26 = int_to_ptr.vmem [resolvable:$true] %s205_s26  ;;  %s208_s29 = int_to_ptr.hbm [resolvable:$true] %s207_s29 }
   0x7   :  { %v242_v9 = vld [vmem:[%s389_s1 + $0x8] sm:$0xff]  ;;  %126 = vperm.xlu2 %252, %v112_v12   ;;  %v113_v16 = vld [vmem:[%s392_s4 + $0x18] sm:$0xff]  ;;  %v177_v23 = vld [vmem:[%s394_s6] sm:$0xff] }
   0x8   :  { %v244_v31 = vld [vmem:[%s391_s3] sm:$0xff]  ;;  %v245_v32 = vld [vmem:[%s391_s3 + $0x8] sm:$0xff] }
   0x9   :  { %v176_v51 = vld [vmem:[%s393_s5] sm:$0xf] }
   0xa   :  { %55 = vperm.xlu0 %250, %v37_v5  }
   0xc   :  { %45 = vperm.xlu1 %251, %v35_v6  }
   0xf   :  { %131 = vperm.xlu2 %252, %v113_v16  }
  0x12   :  { %116 = vperm.xlu0 %250, %v110_v7  }
  0x14   :  { %121 = vperm.xlu1 %251, %v111_v8  }
  0x15   :  { %229 = vmatmul.msk.bf16.gmra.mxu0 %vm74_vm0, %v242_v9 }
  0x17   :  { %180 = vperm.xlu2 %252, %v177_v23  }
  0x61   :  { %v127_v34 = vpop.permute.xlu2 %126 }
  0x69   :  { %v132_v39 = vpop.permute.xlu2 %131 }
  0x71   :  { %v181_v52 = vpop.permute.xlu2 %180 }
  0x74   :  { %v51_v14 = vpop.permute.xlu0 %50 }
  0x76   :  { %v41_v13 = vpop.permute.xlu1 %40 }
  0x7c   :  { %v56_v19 = vpop.permute.xlu0 %55 }
  0x7e   :  { %v46_v17 = vpop.permute.xlu1 %45 }
  0x82   :  { %v90_v10 = vpop.f32.mrf.mxu0 }
  0x83   :  { %v91_v24 = vadd.f32 %v90_v10, %v41_v13 }
  0x84   :  { %v117_v43 = vpop.permute.xlu0 %116 }
  0x86   :  { %v122_v38 = vpop.permute.xlu1 %121 }
  0x8a   :  { %v92_v11 = vpop.f32.mrf.mxu0 }
  0x8b   :  { %v93_v21 = vadd.f32 %v92_v11, %v46_v17 }
  0x92   :  { %v95_v15 = vpop.f32.mrf.mxu0 }
  0x93   :  { %v96_v18 = vadd.f32 %v95_v15, %v51_v14 }
  0x95   :  { %253 = vtanh.f32 %v96_v18 }
  0x9a   :  { %v97_v20 = vpop.f32.mrf.mxu0 }
  0x9b   :  { %v98_v22 = vadd.f32 %v97_v20, %v56_v19  ;;  %v254_v25 = vpop.eup %253 }
  0x9d   :  { %255 = vtanh.f32 %v98_v22 }
  0x9e   :  { %257 = vtanh.f32 %v93_v21 }
  0x9f   :  { %259 = vtanh.f32 %v91_v24 }
  0xa3   :  { %v256_v26 = vpop.eup %255 }
  0xa4   :  { %v105_v27 = vpack.c.bf16 %v256_v26, %v254_v25  ;;  %v258_v28 = vpop.eup %257 }
  0xa5   :  { %v260_v29 = vpop.eup %259 }
  0xa6   :  { %157 = vmatpush.bf16.msra.mxu1 %v105_v27  ;;  %246 = vmatpush.bf16.msra.mxu3 %v105_v27  ;;  %v104_v30 = vpack.c.bf16 %v258_v28, %v260_v29 }
  0xaa   :  { %158 = vmatpush.bf16.msra.mxu1 %v104_v30  ;;  %247 = vmatpush.bf16.msra.mxu3 %v104_v30 }
  0xad   :  { %238 = vmatmul.msk.bf16.vlgmr.msra.gmra.mxu1 %vm144_vm1, %v244_v31  ;;  %239 = vmatmul.msk.bf16.vlgmr.msra.gmra.mxu3 %vm144_vm1, %v245_v32 }
 0x12a   :  { %v160_v33 = vpop.f32.mrf.mxu1 }
 0x12b   :  { %v161_v44 = vadd.f32 %v160_v33, %v117_v43 }
 0x130   :  { %v165_v35 = vpop.f32.mrf.mxu3 }
 0x131   :  { %v166_v36 = vadd.f32 %v165_v35, %v127_v34 }
 0x132   :  { %v162_v37 = vpop.f32.mrf.mxu1 }
 0x133   :  { %v163_v41 = vadd.f32 %v162_v37, %v122_v38  ;;  %261 = vtanh.f32 %v166_v36 }
 0x138   :  { %v167_v40 = vpop.f32.mrf.mxu3 }
 0x139   :  { %v168_v42 = vadd.f32 %v167_v40, %v132_v39  ;;  %v262_v45 = vpop.eup %261 }
 0x13b   :  { %263 = vtanh.f32 %v168_v42 }
 0x13c   :  { %265 = vtanh.f32 %v163_v41 }
 0x13d   :  { %267 = vtanh.f32 %v161_v44 }
 0x141   :  { %v264_v46 = vpop.eup %263 }
 0x142   :  { %v175_v47 = vpack.c.bf16 %v264_v46, %v262_v45  ;;  %v266_v48 = vpop.eup %265 }
 0x143   :  { %v268_v49 = vpop.eup %267 }
 0x144   :  { %192 = vmatpush.bf16.msra.mxu2 %v175_v47  ;;  %v174_v50 = vpack.c.bf16 %v266_v48, %v268_v49 }
 0x148   :  { %193 = vmatpush.bf16.msra.mxu2 %v174_v50 }
 0x14b   :  { %240 = vmatmul.msk.bf16.vlgmr.msra.gmra.mxu2 %vm144_vm1, %v176_v51 }
 0x1ce   :  { %v195_v53 = vpop.f32.mrf.mxu2 }
 0x1cf   :  { %v196_v54 = vadd.f32 %v195_v53, %v181_v52 }
 0x1d1   :  { %199 = vst [vmem:[#allocation2] sm:$0xff] %v196_v54 }
 0x1d2   :  { %210 = dma.vmem_to_hbm [thread:$0]  %s206_s26, 128, %s208_s29, [#allocation3]  }
 0x1d6   :  { %v197_v55 = vpop.f32.mrf.mxu2 }
 0x1d7   :  { %293 = dma.done.wait [#allocation3], 128  }
 0x1d8   :  { %294 = vsyncadd [#allocation3], 4294967168 }
 0x1d9   :  { %215 = vsyncpa [#allocation3], 1 }

</bundles_post_ra>
